<compile_context>
chip_gen: v6e
topology: v6e:2x2x1
jax: 0.10.0
libtpu: 0.0.40
codegen_flags: <defaults>
</compile_context>

<pallas_src>
import jax
import jax.numpy as jnp
from jax.experimental import pallas as pl
from jax.experimental.pallas import tpu as pltpu


def mlp_kernel(x_ref, w1_ref, b1_ref, w2t_ref, b2_ref, o_ref):
    tb = x_ref.shape[0]
    # Layer 1 on the MXU, f32 accumulation.
    h = jnp.dot(x_ref[...], w1_ref[...], preferred_element_type=jnp.float32)
    h = jnp.maximum(h + b1_ref[...], 0.0)              # bias + ReLU on the VPU (f32)
    # Layer 2: single output column -> VPU multiply + lane reduction (skip MXU).
    # w2t_ref is (1, hidden) and broadcasts over the tb rows of h.
    logits = jnp.sum(h * w2t_ref[...], axis=-1) + b2_ref[0]   # (tb,), f32
    # Lane-dense store: output block is (1, tb).
    o_ref[...] = logits.reshape(1, tb).astype(o_ref.dtype)


def dense_two_layer_forward(x, w1, b1, w2, b2, *, batch_tile=None,
                            input_dtype=None):
    """x: [B, input_size], w1: [input_size, hidden], b1: [1, hidden] (or [hidden]),
       w2: [hidden, 1], b2: [1, 1] (or scalar)  ->  logits [B, 1] (float32).

    batch_tile: rows per grid step (must divide B; multiples of 128 recommended
                for large B so the lane-dense output block is unmasked).
    input_dtype: optional downcast (e.g. jnp.bfloat16) for the streamed
                 operands x and w1 on v6e/v7x; epilogue math stays f32.
    """
    B, in_sz = x.shape
    hid = w1.shape[1]

    if batch_tile is None:
        tb = B
        for cand in (2048, 1024, 512, 256, 128):
            if B % cand == 0:
                tb = cand
                break
    else:
        tb = batch_tile
    assert B % tb == 0, "pad the batch to a multiple of batch_tile"

    if input_dtype is not None:
        x = x.astype(input_dtype)
        w1 = w1.astype(input_dtype)

    b1r = jnp.asarray(b1, jnp.float32).reshape(1, hid)
    w2t = jnp.asarray(w2, jnp.float32).reshape(1, hid)   # pre-transposed row vector
    b2s = jnp.asarray(b2, jnp.float32).reshape(1)        # SMEM scalar

    flops = 2 * B * in_sz * hid + 2 * B * hid
    bytes_accessed = (x.size * x.dtype.itemsize + w1.size * w1.dtype.itemsize
                      + b1r.size * 4 + w2t.size * 4 + 4 + B * 4)

    grid = (B // tb,)
    out = pl.pallas_call(
        mlp_kernel,
        out_shape=jax.ShapeDtypeStruct((1, B), jnp.float32),   # lane-dense logits
        grid_spec=pltpu.PrefetchScalarGridSpec(
            num_scalar_prefetch=0,
            grid=grid,
            in_specs=[
                pl.BlockSpec((tb, in_sz), lambda i: (i, 0)),    # x tile (streamed)
                pl.BlockSpec((in_sz, hid), lambda i: (0, 0)),   # W1 (resident)
                pl.BlockSpec((1, hid), lambda i: (0, 0)),       # b1 (resident)
                pl.BlockSpec((1, hid), lambda i: (0, 0)),       # w2^T row vector
                pl.BlockSpec(memory_space=pltpu.MemorySpace.SMEM),  # b2 scalar
            ],
            out_specs=pl.BlockSpec((1, tb), lambda i: (0, i)),
        ),
        compiler_params=pltpu.CompilerParams(
            dimension_semantics=("parallel",)),
        cost_estimate=pl.CostEstimate(flops=flops, transcendentals=0,
                                      bytes_accessed=bytes_accessed),
    )(x, w1, b1r, w2t, b2s)
    return out.reshape(B, 1)


def init_params(key, input_size=30, hidden_size=30):
    """Deterministic init matching PyTorch nn.Linear shapes
    (stored transposed: [in, out])."""
    k1, k2, k3, k4 = jax.random.split(key, 4)
    bound1 = 1.0 / jnp.sqrt(input_size)
    bound2 = 1.0 / jnp.sqrt(hidden_size)
    w1 = jax.random.uniform(k1, (input_size, hidden_size), jnp.float32,
                            -bound1, bound1)
    b1 = jax.random.uniform(k2, (1, hidden_size), jnp.float32, -bound1, bound1)
    w2 = jax.random.uniform(k3, (hidden_size, 1), jnp.float32, -bound2, bound2)
    b2 = jax.random.uniform(k4, (1, 1), jnp.float32, -bound2, bound2)
    return w1, b1, w2, b2


if __name__ == "__main__":
    input_size, hidden_size = 30, 30
    key = jax.random.PRNGKey(0)
    kx, kp, kx2 = jax.random.split(key, 3)
    w1, b1, w2, b2 = init_params(kp, input_size, hidden_size)

    # Small-shape check (single grid step, block == full array).
    batch = 8
    x = jax.random.normal(kx, (batch, input_size), jnp.float32)
    logits = jax.block_until_ready(dense_two_layer_forward(x, w1, b1, w2, b2))
    ref = jnp.maximum(x @ w1 + b1, 0.0) @ w2 + b2
    assert logits.shape == (batch, 1)
    assert jnp.allclose(logits, ref, atol=1e-5, rtol=1e-5)

    # Multi-tile check: lane-dense (1, 128) output blocks, grid of 2 steps
    # (exercises the batch-tiled / megacore-parallel path).
    batch2 = 256
    x2 = jax.random.normal(kx2, (batch2, input_size), jnp.float32)
    logits2 = jax.block_until_ready(
        dense_two_layer_forward(x2, w1, b1, w2, b2, batch_tile=128))
    ref2 = jnp.maximum(x2 @ w1 + b1, 0.0) @ w2 + b2
    assert logits2.shape == (batch2, 1)
    assert jnp.allclose(logits2, ref2, atol=1e-5, rtol=1e-5)

    print("KERNEL_OK")
</pallas_src>

<mosaic_0001>
module attributes {stable_mosaic.version = 11 : i64} {
  func.func @mlp_kernel(%arg0: i32, %arg1: memref<8x30xf32, #tpu.memory_space<vmem>>, %arg2: memref<30x30xf32, #tpu.memory_space<vmem>>, %arg3: memref<1x30xf32, #tpu.memory_space<vmem>>, %arg4: memref<1x30xf32, #tpu.memory_space<vmem>>, %arg5: memref<1xf32, #tpu.memory_space<smem>>, %arg6: memref<1x8xf32, #tpu.memory_space<vmem>>) attributes {dimension_semantics = [#tpu.dimension_semantics<parallel>], iteration_bounds = array<i64: 1>, scalar_prefetch = 0 : i64, scratch_operands = 0 : i64, tpu.core_type = #tpu.core_type<tc>, window_params = [{transform_indices = @transform_0, window_bounds = array<i64: 8, 30>}, {pipeline_mode = #tpu.pipeline_mode<synchronous>, transform_indices = @transform_1, window_bounds = array<i64: 30, 30>}, {pipeline_mode = #tpu.pipeline_mode<synchronous>, transform_indices = @transform_2, window_bounds = array<i64: 1, 30>}, {pipeline_mode = #tpu.pipeline_mode<synchronous>, transform_indices = @transform_3, window_bounds = array<i64: 1, 30>}, {transform_indices = @transform_4, window_bounds = array<i64: 1>}, {transform_indices = @transform_5, window_bounds = array<i64: 1, 8>}]} {
    %c0 = arith.constant 0 : index
    %c0_0 = arith.constant 0 : index
    %0 = vector.load %arg1[%c0, %c0_0] : memref<8x30xf32, #tpu.memory_space<vmem>>, vector<8x30xf32>
    %c0_1 = arith.constant 0 : index
    %c0_2 = arith.constant 0 : index
    %1 = vector.load %arg2[%c0_1, %c0_2] : memref<30x30xf32, #tpu.memory_space<vmem>>, vector<30x30xf32>
    %cst = arith.constant dense<0.000000e+00> : vector<8x30xf32>
    %2 = tpu.matmul %0, %1, %cst {dimension_numbers = #tpu.dot_dimension_numbers<[1], [0], [0], [1], [0, 0, 1, 1], [], []>} : vector<8x30xf32>, vector<30x30xf32>, vector<8x30xf32> -> vector<8x30xf32>
    %c0_3 = arith.constant 0 : index
    %c0_4 = arith.constant 0 : index
    %3 = vector.load %arg3[%c0_3, %c0_4] : memref<1x30xf32, #tpu.memory_space<vmem>>, vector<1x30xf32>
    %4 = vector.broadcast %3 : vector<1x30xf32> to vector<8x30xf32>
    %5 = arith.addf %2, %4 : vector<8x30xf32>
    %cst_5 = arith.constant 0.000000e+00 : f32
    %6 = vector.broadcast %cst_5 : f32 to vector<8x30xf32>
    %7 = arith.maximumf %5, %6 : vector<8x30xf32>
    %c0_6 = arith.constant 0 : index
    %c0_7 = arith.constant 0 : index
    %8 = vector.load %arg4[%c0_6, %c0_7] : memref<1x30xf32, #tpu.memory_space<vmem>>, vector<1x30xf32>
    %9 = vector.broadcast %8 : vector<1x30xf32> to vector<8x30xf32>
    %10 = arith.mulf %7, %9 : vector<8x30xf32>
    %cst_8 = arith.constant dense<0.000000e+00> : vector<8xf32>
    %11 = vector.multi_reduction <add>, %10, %cst_8 [1] : vector<8x30xf32> to vector<8xf32>
    %c0_9 = arith.constant 0 : index
    %12 = memref.load %arg5[%c0_9] : memref<1xf32, #tpu.memory_space<smem>>
    %13 = vector.broadcast %12 : f32 to vector<8xf32>
    %14 = arith.addf %11, %13 : vector<8xf32>
    %15 = vector.shape_cast %14 : vector<8xf32> to vector<1x8xf32>
    %c0_10 = arith.constant 0 : index
    %c0_11 = arith.constant 0 : index
    %16 = vector.load %arg6[%c0_10, %c0_11] : memref<1x8xf32, #tpu.memory_space<vmem>>, vector<1x8xf32>
    tpu.vector_store %arg6[%c0_10, %c0_11], %15 {strides = array<i32>} : memref<1x8xf32, #tpu.memory_space<vmem>>, vector<1x8xf32>,
    return
  }
  func.func @transform_0(%arg0: i32) -> (i32, i32) {
    %c0_i32 = arith.constant 0 : i32
    %c0_i32_0 = arith.constant 0 : i32
    return %arg0, %c0_i32 : i32, i32
  }
  func.func @transform_1(%arg0: i32) -> (i32, i32) {
    %c0_i32 = arith.constant 0 : i32
    %c0_i32_0 = arith.constant 0 : i32
    %c0_i32_1 = arith.constant 0 : i32
    return %c0_i32, %c0_i32_0 : i32, i32
  }
  func.func @transform_2(%arg0: i32) -> (i32, i32) {
    %c0_i32 = arith.constant 0 : i32
    %c0_i32_0 = arith.constant 0 : i32
    %c0_i32_1 = arith.constant 0 : i32
    return %c0_i32, %c0_i32_0 : i32, i32
  }
  func.func @transform_3(%arg0: i32) -> (i32, i32) {
    %c0_i32 = arith.constant 0 : i32
    %c0_i32_0 = arith.constant 0 : i32
    %c0_i32_1 = arith.constant 0 : i32
    return %c0_i32, %c0_i32_0 : i32, i32
  }
  func.func @transform_4(%arg0: i32) -> i32 {
    %c0_i32 = arith.constant 0 : i32
    %c0_i32_0 = arith.constant 0 : i32
    return %c0_i32 : i32
  }
  func.func @transform_5(%arg0: i32) -> (i32, i32) {
    %c0_i32 = arith.constant 0 : i32
    %c0_i32_0 = arith.constant 0 : i32
    return %c0_i32, %arg0 : i32, i32
  }
}

</mosaic_0001>

<bundles_post_ra>
// kernel: tpu_custom_call.1
= control target key start
LH: loop header
LB: loop body
LE: loop exit
PB: predicated region body
PF: predicated region fallthrough
CT: control target
= control target key end

     0   :  { %11 = vsyncpa [#allocation4], 0  ;;  %s327_s0 = inlined_call_operand.hbm [shape: f32[8,30], index: 0, kind: input, shape index: {}]   ;;  %s328_s1 = inlined_call_operand.hbm [shape: f32[30,30], index: 1, kind: input, shape index: {}]   ;;  %s329_s2 = inlined_call_operand.vmem [shape: f32[1,30], index: 2, kind: input, shape index: {}]   ;;  %s330_s3 = inlined_call_operand.vmem [shape: f32[1,30], index: 3, kind: input, shape index: {}]   ;;  %s331_s4 = inlined_call_operand.<no memory space> [shape: f32[1], index: 4, kind: input, shape index: {}]   ;;  %s332_s5 = inlined_call_operand.hbm [shape: f32[1,8], index: 5, kind: output, shape index: {}]  }
   0x1   :  { %12 = vsyncpa [#allocation7], 0 }
   0x2   :  { %13 = vsyncpa [#allocation5], 0  ;;  %s272_s18 = smov [#allocation3]   ;;  %s273_s20 = smov [#allocation6]  }
   0x3   :  { %s20_s19 = sshll.u32 %s272_s18, 4  ;;  %s29_s21 = sshll.u32 %s273_s20, 4  ;;  %s21_s19 = int_to_ptr.vmem [resolvable:$true] %s20_s19  ;;  %s30_s21 = int_to_ptr.vmem [resolvable:$true] %s29_s21 }
   0x4   :  { %s214_s22 = scalar_lea.vmem %s21_s19, 128  ;;  %p219_p1 = scmp.lt.s32.totalorder %s21_s19, %s21_s19 }
   0x5   :  { %p215_p0 = scmp.ne.s32.totalorder %s21_s19, %s214_s22  ;;  %p220_p2 = scmp.lt.s32.totalorder %s214_s22, %s214_s22 }
   0x7   :  { %p221_p3 = por %p220_p2, %p219_p1 }
   0x9   :  { %p222_p4 = pnand %p221_p3, %p215_p0 }
   0xb   :  { %225 = shalt.err (!%p222_p4)
}
   0xc   :  { %23 = dma.hbm_to_vmem [thread:$0]  %s327_s0, 128, %s21_s19, [#allocation4]  }
   0xd   :  { %s234_s25 = scalar_lea.vmem %s30_s21, 512  ;;  %p239_p6 = scmp.lt.s32.totalorder %s30_s21, %s30_s21 }
   0xe   :  { %p235_p5 = scmp.ne.s32.totalorder %s30_s21, %s234_s25  ;;  %p240_p7 = scmp.lt.s32.totalorder %s234_s25, %s234_s25 }
  0x10   :  { %p241_p8 = por %p240_p7, %p239_p6 }
  0x12   :  { %p242_p9 = pnand %p241_p8, %p235_p5 }
  0x14   :  { %245 = shalt.err (!%p242_p9)
}
  0x15   :  { %s274_s26 = smov 128   ;;  %s275_s27 = smov 8  }
  0x16   :  { %35 = dma.hbm_to_vmem [thread:$0]  %s328_s1, 512, %s30_s21, [#allocation7], %s274_s26, %s274_s26, %s275_s27  }
  0x17   :  { %266 = dma.done.wait [#allocation4], 128  }
  0x18   :  { %267 = vsyncadd [#allocation4], 4294967168 }
  0x19   :  { %268 = dma.done.wait [#allocation7], 512  }
  0x1a   :  { %269 = vsyncadd [#allocation7], 4294966784  ;;  %v276_v0 = vmov 0.0   ;;  %vm277_vm0 = vmmov 0   ;;  %vm64_vm1 = vcmask 1045504   ;;  %v51_v2 = vld [vmem:[#allocation6 + $0x10] sm:$0xff]  ;;  %v154_v14 = vlaneseq }
  0x1b   :  { %188 = vmatprep.subr.mxu0 %v276_v0  ;;  %196 = vmatprep.mubr.msk.f32.mxu0 %vm277_vm0, %v276_v0  ;;  %v52_v1 = vld [vmem:[#allocation6 + $0x18] sm:$0x3f]  ;;  %v50_v3 = vld [vmem:[#allocation6 + $0x8] sm:$0xff]  ;;  %v49_v4 = vld [vmem:[#allocation6] sm:$0xff]  ;;  %vm60_vm2 = vcmask 244736   ;;  %v151_v17 = vstv %s331_s4  ;;  %vm161_vm3 = vcmask 57344  }
  0x1c   :  { %189 = vmatpush3.msk.msra.mxu0 %vm64_vm1, %v52_v1  ;;  %v48_v5 = vld [vmem:[#allocation3] sm:$0xff]  ;;  %v155_v15 = vand.u32 127, %v154_v14  ;;  %v157_v16 = vshrl.u32 %v154_v14, 7 }
  0x1d   :  { %190 = vmatprep.subr.mxu0 %v276_v0  ;;  %v179_v6 = vld [vmem:[%s329_s2] ss:$0 sm:$0xff]  ;;  %s278_s2 = smov [#allocation8]  }
  0x1e   :  { %191 = vmatpush3.msra.mxu0 %v51_v2  ;;  %v182_v10 = vld [vmem:[%s330_s3] ss:$0 sm:$0xff]  ;;  %v158_v18 = vsub.s32 %v155_v15, %v157_v16  ;;  %s169_s9 = sshll.u32 %s278_s2, 4  ;;  %s170_s9 = int_to_ptr.vmem [resolvable:$true] %s169_s9 }
  0x1f   :  { %192 = vmatprep.subr.mxu0 %v276_v0  ;;  %s246_s3 = scalar_lea.vmem %s170_s9, 16  ;;  %s250_s10 = scalar_lea.vmem %s170_s9, 32 }
  0x20   :  { %193 = vmatpush3.msra.mxu0 %v50_v3  ;;  %p247_p10 = scmp.ne.s32.totalorder %s170_s9, %s246_s3  ;;  %p251_p11 = scmp.lt.s32.totalorder %s170_s9, %s170_s9 }
  0x21   :  { %194 = vmatprep.subr.mxu0 %v276_v0  ;;  %p252_p12 = scmp.lt.s32.totalorder %s250_s10, %s246_s3 }
  0x22   :  { %195 = vmatpush3.msra.mxu0 %v49_v4 }
  0x23   :  { %197 = vmatmul.mubr.msk.f32.vlgmr.msra.gmra.mxu0 %vm60_vm2, %v48_v5  ;;  %p253_p13 = por %p252_p12, %p251_p11 }
  0x25   :  { %p254_p0 = pnand %p253_p13, %p247_p10 }
  0xe3   :  { %v134_v7 = vpop.f32.mrf.mxu0 }
  0xe4   :  { %v135_v8 = vadd.f32 %v179_v6, %v134_v7 }
  0xe5   :  { %v198_v9 = vpop.f32.mrf.mxu0 }
  0xe6   :  { %v138_v11 = vmax.f32 %v135_v8, 0.0 }
  0xe8   :  { %v146_v12 = vmul.f32 %v182_v10, %v138_v11 }
  0xea   :  { %v147_v13 = vsel %vm60_vm2, %v146_v12, 0.0 }
  0xeb   :  { %148 = vadd.xlane.f32.xlu0 %v147_v13 }
 0x174   :  { %v149_v19 = vpop.xlane.xlu0 %148 }
 0x175   :  { %v152_v20 = vadd.f32 %v151_v17, %v149_v19 }
 0x177   :  { %v159_v21 = vrot.slane %v152_v20, %v158_v18 }
 0x179   :  { %162 = vst.msk [vmem:[#allocation8] sm:$0x1] %vm161_vm3, %v159_v21 }
 0x17a   :  { %257 = shalt.err (!%p254_p0)
}
 0x17b   :  { %172 = dma.vmem_to_hbm [thread:$0]  %s170_s9, 16, %s332_s5, [#allocation5]  }
 0x17c   :  { %270 = dma.done.wait [#allocation5], 16  }
 0x17d   :  { %271 = vsyncadd [#allocation5], 4294967280 }
 0x17e   :  { %176 = vsyncpa [#allocation4], 1 }
 0x17f   :  { %177 = vsyncpa [#allocation7], 1 }
 0x180   :  { %178 = vsyncpa [#allocation5], 1 }

</bundles_post_ra>
